<compile_context>
chip_gen: v7x
topology: tpu7x:2x2x1
jax: 0.10.0
libtpu: 0.0.40
codegen_flags: <defaults>
</compile_context>

<pallas_src>
import jax
import jax.numpy as jnp
from jax.experimental import pallas as pl
from jax.experimental.pallas import tpu as pltpu

HIDDEN = 256          # hidden_size in the PyTorch module
SUBLANE = 8           # f32 sublane tile
DEFAULT_BATCH_TILE = 1024


def _cdiv(a, b):
    return (a + b - 1) // b


def _round_up(n, m):
    return _cdiv(n, m) * m


def hapt_mlp_kernel(x_ref, w1_ref, b1_ref, w2_ref, b2_ref, w3_ref, b3_ref,
                    wo_ref, bo_ref, o_ref):
    """One batch tile: 4 MXU matmuls + bias/ReLU fused, all weights VMEM-resident."""
    x = x_ref[...]                                              # [TB, IN] f32

    # input_layer + ReLU  (bf16 operands, f32 accumulate, f32 elementwise)
    h = jnp.dot(x.astype(jnp.bfloat16), w1_ref[...],
                preferred_element_type=jnp.float32) + b1_ref[...]
    h = jnp.maximum(h, 0.0)

    # fc_list[0] + ReLU
    h = jnp.dot(h.astype(jnp.bfloat16), w2_ref[...],
                preferred_element_type=jnp.float32) + b2_ref[...]
    h = jnp.maximum(h, 0.0)

    # fc_list[1] + ReLU
    h = jnp.dot(h.astype(jnp.bfloat16), w3_ref[...],
                preferred_element_type=jnp.float32) + b3_ref[...]
    h = jnp.maximum(h, 0.0)

    # output_layer (no activation)
    out = jnp.dot(h.astype(jnp.bfloat16), wo_ref[...],
                  preferred_element_type=jnp.float32) + bo_ref[...]
    o_ref[...] = out.astype(o_ref.dtype)


def _pick_batch_tile(B, batch_tile):
    """Sublane-aligned batch tile; prefers an even grid-step count for v7x megacore."""
    if B <= batch_tile:
        # Split into (up to) 2 half-tiles so both TensorCores get work on v7x.
        return max(SUBLANE, _round_up(_cdiv(B, 2), SUBLANE))
    n = _cdiv(B, batch_tile)
    if n % 2:
        n += 1                      # even number of grid steps
    return _round_up(_cdiv(B, n), SUBLANE)


def hapt_mlp_forward(x, params, meta, *, batch_tile=DEFAULT_BATCH_TILE):
    """x: [B, input_size] float32. params: pre-transposed bf16 weights + f32 biases."""
    B, in_size = x.shape
    out_size = meta["out_size"]
    assert in_size == meta["in_size"]

    tb = _pick_batch_tile(B, batch_tile)
    grid = (_cdiv(B, tb),)          # ragged last tile handled by Pallas masking

    def resident(shape):
        # Constant block index: weight/bias stays in VMEM across all grid steps.
        return pl.BlockSpec(shape, lambda i: (0, 0))

    flops = 2 * B * (in_size * HIDDEN + 2 * HIDDEN * HIDDEN + HIDDEN * out_size)
    bytes_accessed = (
        x.size * x.dtype.itemsize
        + B * out_size * 4
        + sum(int(p.size) * p.dtype.itemsize for p in params.values())
    )

    out = pl.pallas_call(
        hapt_mlp_kernel,
        out_shape=jax.ShapeDtypeStruct((B, out_size), jnp.float32),
        grid=grid,
        in_specs=[
            # x tile, pipelined over the batch; last dim == full array dim (no pad).
            pl.BlockSpec((tb, in_size), lambda i: (i, 0)),
            resident((in_size, HIDDEN)), resident((1, HIDDEN)),   # input_layer
            resident((HIDDEN, HIDDEN)), resident((1, HIDDEN)),    # fc_list[0]
            resident((HIDDEN, HIDDEN)), resident((1, HIDDEN)),    # fc_list[1]
            resident((HIDDEN, out_size)), resident((1, out_size)),  # output_layer
        ],
        out_specs=pl.BlockSpec((tb, out_size), lambda i: (i, 0)),
        compiler_params=pltpu.CompilerParams(
            dimension_semantics=("parallel",)),  # batch tiles shard across TCs on v7x
        cost_estimate=pl.CostEstimate(
            flops=flops, transcendentals=0, bytes_accessed=bytes_accessed),
    )(x,
      params["w1"], params["b1"],
      params["w2"], params["b2"],
      params["w3"], params["b3"],
      params["wo"], params["bo"])

    return out


def init_params(key, input_size, output_size):
    """Deterministic synthetic params.

    Returns (kernel params: bf16 weights [in, out] + f32 biases [1, out], meta,
    original f32 params).  PyTorch Linear stores [out, in] and computes
    x @ W.T + b — storing the transpose gives identical math.
    """
    ks = jax.random.split(key, 8)

    def linear(kw, kb, fan_in, fan_out):
        # mimic PyTorch default init range (uniform +/- 1/sqrt(fan_in))
        bound = 1.0 / jnp.sqrt(jnp.float32(fan_in))
        w = jax.random.uniform(kw, (fan_in, fan_out), jnp.float32, -bound, bound)
        b = jax.random.uniform(kb, (1, fan_out), jnp.float32, -bound, bound)
        return w, b

    w1, b1 = linear(ks[0], ks[1], input_size, HIDDEN)
    w2, b2 = linear(ks[2], ks[3], HIDDEN, HIDDEN)
    w3, b3 = linear(ks[4], ks[5], HIDDEN, HIDDEN)
    wo, bo = linear(ks[6], ks[7], HIDDEN, output_size)
    f32_params = {"w1": w1, "b1": b1, "w2": w2, "b2": b2,
                  "w3": w3, "b3": b3, "wo": wo, "bo": bo}

    params = {
        "w1": w1.astype(jnp.bfloat16), "b1": b1,
        "w2": w2.astype(jnp.bfloat16), "b2": b2,
        "w3": w3.astype(jnp.bfloat16), "b3": b3,
        "wo": wo.astype(jnp.bfloat16), "bo": bo,
    }
    meta = {"in_size": input_size, "out_size": output_size}
    return params, meta, f32_params


def reference_forward_bf16(x, params):
    """Same math path as the kernel (bf16 dot operands, f32 accumulate)."""
    def dense(h, w, b, relu=True):
        y = jnp.dot(h.astype(jnp.bfloat16), w,
                    preferred_element_type=jnp.float32) + b
        return jnp.maximum(y, 0.0) if relu else y

    h = dense(x, params["w1"], params["b1"])
    h = dense(h, params["w2"], params["b2"])
    h = dense(h, params["w3"], params["b3"])
    return dense(h, params["wo"], params["bo"], relu=False)


def reference_forward_f32(x, p):
    h = jnp.maximum(x @ p["w1"] + p["b1"], 0.0)
    h = jnp.maximum(h @ p["w2"] + p["b2"], 0.0)
    h = jnp.maximum(h @ p["w3"] + p["b3"], 0.0)
    return h @ p["wo"] + p["bo"]


if __name__ == "__main__":
    cfg = {"input_size": 32, "output_size": 10}

    key = jax.random.PRNGKey(0)
    k_x, k_x2, k_p = jax.random.split(key, 3)

    params, meta, f32_params = init_params(k_p, cfg["input_size"], cfg["output_size"])

    # --- small batch (single grid step) ---
    x_small = jax.random.normal(k_x, (8, cfg["input_size"]), jnp.float32)
    out_small = jax.block_until_ready(hapt_mlp_forward(x_small, params, meta))
    assert out_small.shape == (8, cfg["output_size"])
    ref_small = reference_forward_bf16(x_small, params)
    assert jnp.allclose(out_small, ref_small, atol=1e-3, rtol=1e-3), "mismatch vs bf16 reference"
    ref_f32 = reference_forward_f32(x_small, f32_params)
    assert jnp.allclose(out_small, ref_f32, atol=1e-1, rtol=1e-1), "mismatch vs f32 reference"

    # --- batch that exercises the batch grid + ragged last tile (2 tiles of 264) ---
    x_big = jax.random.normal(k_x2, (520, cfg["input_size"]), jnp.float32)
    out_big = jax.block_until_ready(hapt_mlp_forward(x_big, params, meta))
    assert out_big.shape == (520, cfg["output_size"])
    ref_big = reference_forward_bf16(x_big, params)
    assert jnp.allclose(out_big, ref_big, atol=1e-3, rtol=1e-3), "mismatch vs bf16 reference (grid)"

    print("KERNEL_OK")
</pallas_src>

<mosaic_0001>
module attributes {stable_mosaic.version = 11 : i64} {
  func.func @hapt_mlp_kernel(%arg0: i32, %arg1: memref<8x32xf32, #tpu.memory_space<vmem>>, %arg2: memref<32x256xbf16, #tpu.memory_space<vmem>>, %arg3: memref<1x256xf32, #tpu.memory_space<vmem>>, %arg4: memref<256x256xbf16, #tpu.memory_space<vmem>>, %arg5: memref<1x256xf32, #tpu.memory_space<vmem>>, %arg6: memref<256x256xbf16, #tpu.memory_space<vmem>>, %arg7: memref<1x256xf32, #tpu.memory_space<vmem>>, %arg8: memref<256x10xbf16, #tpu.memory_space<vmem>>, %arg9: memref<1x10xf32, #tpu.memory_space<vmem>>, %arg10: memref<8x10xf32, #tpu.memory_space<vmem>>) attributes {dimension_semantics = [#tpu.dimension_semantics<parallel>], iteration_bounds = array<i64: 1>, scalar_prefetch = 0 : i64, scratch_operands = 0 : i64, tpu.core_type = #tpu.core_type<tc>, window_params = [{transform_indices = @transform_0, window_bounds = array<i64: 8, 32>}, {pipeline_mode = #tpu.pipeline_mode<synchronous>, transform_indices = @transform_1, window_bounds = array<i64: 32, 256>}, {pipeline_mode = #tpu.pipeline_mode<synchronous>, transform_indices = @transform_2, window_bounds = array<i64: 1, 256>}, {pipeline_mode = #tpu.pipeline_mode<synchronous>, transform_indices = @transform_3, window_bounds = array<i64: 256, 256>}, {pipeline_mode = #tpu.pipeline_mode<synchronous>, transform_indices = @transform_4, window_bounds = array<i64: 1, 256>}, {pipeline_mode = #tpu.pipeline_mode<synchronous>, transform_indices = @transform_5, window_bounds = array<i64: 256, 256>}, {pipeline_mode = #tpu.pipeline_mode<synchronous>, transform_indices = @transform_6, window_bounds = array<i64: 1, 256>}, {pipeline_mode = #tpu.pipeline_mode<synchronous>, transform_indices = @transform_7, window_bounds = array<i64: 256, 10>}, {pipeline_mode = #tpu.pipeline_mode<synchronous>, transform_indices = @transform_8, window_bounds = array<i64: 1, 10>}, {transform_indices = @transform_9, window_bounds = array<i64: 8, 10>}]} {
    %c0 = arith.constant 0 : index
    %c0_0 = arith.constant 0 : index
    %0 = vector.load %arg1[%c0, %c0_0] : memref<8x32xf32, #tpu.memory_space<vmem>>, vector<8x32xf32>
    %1 = arith.truncf %0 : vector<8x32xf32> to vector<8x32xbf16>
    %c0_1 = arith.constant 0 : index
    %c0_2 = arith.constant 0 : index
    %2 = vector.load %arg2[%c0_1, %c0_2] : memref<32x256xbf16, #tpu.memory_space<vmem>>, vector<32x256xbf16>
    %cst = arith.constant dense<0.000000e+00> : vector<8x256xf32>
    %3 = tpu.matmul %1, %2, %cst {dimension_numbers = #tpu.dot_dimension_numbers<[1], [0], [0], [1], [0, 0, 1, 1], [], []>} : vector<8x32xbf16>, vector<32x256xbf16>, vector<8x256xf32> -> vector<8x256xf32>
    %c0_3 = arith.constant 0 : index
    %c0_4 = arith.constant 0 : index
    %4 = vector.load %arg3[%c0_3, %c0_4] : memref<1x256xf32, #tpu.memory_space<vmem>>, vector<1x256xf32>
    %5 = vector.broadcast %4 : vector<1x256xf32> to vector<8x256xf32>
    %6 = arith.addf %3, %5 : vector<8x256xf32>
    %cst_5 = arith.constant 0.000000e+00 : f32
    %7 = vector.broadcast %cst_5 : f32 to vector<8x256xf32>
    %8 = arith.maximumf %6, %7 : vector<8x256xf32>
    %9 = arith.truncf %8 : vector<8x256xf32> to vector<8x256xbf16>
    %c0_6 = arith.constant 0 : index
    %c0_7 = arith.constant 0 : index
    %10 = vector.load %arg4[%c0_6, %c0_7] : memref<256x256xbf16, #tpu.memory_space<vmem>>, vector<256x256xbf16>
    %cst_8 = arith.constant dense<0.000000e+00> : vector<8x256xf32>
    %11 = tpu.matmul %9, %10, %cst_8 {dimension_numbers = #tpu.dot_dimension_numbers<[1], [0], [0], [1], [0, 0, 1, 1], [], []>} : vector<8x256xbf16>, vector<256x256xbf16>, vector<8x256xf32> -> vector<8x256xf32>
    %c0_9 = arith.constant 0 : index
    %c0_10 = arith.constant 0 : index
    %12 = vector.load %arg5[%c0_9, %c0_10] : memref<1x256xf32, #tpu.memory_space<vmem>>, vector<1x256xf32>
    %13 = vector.broadcast %12 : vector<1x256xf32> to vector<8x256xf32>
    %14 = arith.addf %11, %13 : vector<8x256xf32>
    %cst_11 = arith.constant 0.000000e+00 : f32
    %15 = vector.broadcast %cst_11 : f32 to vector<8x256xf32>
    %16 = arith.maximumf %14, %15 : vector<8x256xf32>
    %17 = arith.truncf %16 : vector<8x256xf32> to vector<8x256xbf16>
    %c0_12 = arith.constant 0 : index
    %c0_13 = arith.constant 0 : index
    %18 = vector.load %arg6[%c0_12, %c0_13] : memref<256x256xbf16, #tpu.memory_space<vmem>>, vector<256x256xbf16>
    %cst_14 = arith.constant dense<0.000000e+00> : vector<8x256xf32>
    %19 = tpu.matmul %17, %18, %cst_14 {dimension_numbers = #tpu.dot_dimension_numbers<[1], [0], [0], [1], [0, 0, 1, 1], [], []>} : vector<8x256xbf16>, vector<256x256xbf16>, vector<8x256xf32> -> vector<8x256xf32>
    %c0_15 = arith.constant 0 : index
    %c0_16 = arith.constant 0 : index
    %20 = vector.load %arg7[%c0_15, %c0_16] : memref<1x256xf32, #tpu.memory_space<vmem>>, vector<1x256xf32>
    %21 = vector.broadcast %20 : vector<1x256xf32> to vector<8x256xf32>
    %22 = arith.addf %19, %21 : vector<8x256xf32>
    %cst_17 = arith.constant 0.000000e+00 : f32
    %23 = vector.broadcast %cst_17 : f32 to vector<8x256xf32>
    %24 = arith.maximumf %22, %23 : vector<8x256xf32>
    %25 = arith.truncf %24 : vector<8x256xf32> to vector<8x256xbf16>
    %c0_18 = arith.constant 0 : index
    %c0_19 = arith.constant 0 : index
    %26 = vector.load %arg8[%c0_18, %c0_19] : memref<256x10xbf16, #tpu.memory_space<vmem>>, vector<256x10xbf16>
    %cst_20 = arith.constant dense<0.000000e+00> : vector<8x10xf32>
    %27 = tpu.matmul %25, %26, %cst_20 {dimension_numbers = #tpu.dot_dimension_numbers<[1], [0], [0], [1], [0, 0, 1, 1], [], []>} : vector<8x256xbf16>, vector<256x10xbf16>, vector<8x10xf32> -> vector<8x10xf32>
    %c0_21 = arith.constant 0 : index
    %c0_22 = arith.constant 0 : index
    %28 = vector.load %arg9[%c0_21, %c0_22] : memref<1x10xf32, #tpu.memory_space<vmem>>, vector<1x10xf32>
    %29 = vector.broadcast %28 : vector<1x10xf32> to vector<8x10xf32>
    %30 = arith.addf %27, %29 : vector<8x10xf32>
    %c0_23 = arith.constant 0 : index
    %c0_24 = arith.constant 0 : index
    %31 = vector.load %arg10[%c0_23, %c0_24] : memref<8x10xf32, #tpu.memory_space<vmem>>, vector<8x10xf32>
    tpu.vector_store %arg10[%c0_23, %c0_24], %30 {strides = array<i32>} : memref<8x10xf32, #tpu.memory_space<vmem>>, vector<8x10xf32>,
    return
  }
  func.func @transform_0(%arg0: i32) -> (i32, i32) {
    %c0_i32 = arith.constant 0 : i32
    %c0_i32_0 = arith.constant 0 : i32
    return %arg0, %c0_i32 : i32, i32
  }
  func.func @transform_1(%arg0: i32) -> (i32, i32) {
    %c0_i32 = arith.constant 0 : i32
    %c0_i32_0 = arith.constant 0 : i32
    %c0_i32_1 = arith.constant 0 : i32
    return %c0_i32, %c0_i32_0 : i32, i32
  }
  func.func @transform_2(%arg0: i32) -> (i32, i32) {
    %c0_i32 = arith.constant 0 : i32
    %c0_i32_0 = arith.constant 0 : i32
    %c0_i32_1 = arith.constant 0 : i32
    return %c0_i32, %c0_i32_0 : i32, i32
  }
  func.func @transform_3(%arg0: i32) -> (i32, i32) {
    %c0_i32 = arith.constant 0 : i32
    %c0_i32_0 = arith.constant 0 : i32
    %c0_i32_1 = arith.constant 0 : i32
    return %c0_i32, %c0_i32_0 : i32, i32
  }
  func.func @transform_4(%arg0: i32) -> (i32, i32) {
    %c0_i32 = arith.constant 0 : i32
    %c0_i32_0 = arith.constant 0 : i32
    %c0_i32_1 = arith.constant 0 : i32
    return %c0_i32, %c0_i32_0 : i32, i32
  }
  func.func @transform_5(%arg0: i32) -> (i32, i32) {
    %c0_i32 = arith.constant 0 : i32
    %c0_i32_0 = arith.constant 0 : i32
    %c0_i32_1 = arith.constant 0 : i32
    return %c0_i32, %c0_i32_0 : i32, i32
  }
  func.func @transform_6(%arg0: i32) -> (i32, i32) {
    %c0_i32 = arith.constant 0 : i32
    %c0_i32_0 = arith.constant 0 : i32
    %c0_i32_1 = arith.constant 0 : i32
    return %c0_i32, %c0_i32_0 : i32, i32
  }
  func.func @transform_7(%arg0: i32) -> (i32, i32) {
    %c0_i32 = arith.constant 0 : i32
    %c0_i32_0 = arith.constant 0 : i32
    %c0_i32_1 = arith.constant 0 : i32
    return %c0_i32, %c0_i32_0 : i32, i32
  }
  func.func @transform_8(%arg0: i32) -> (i32, i32) {
    %c0_i32 = arith.constant 0 : i32
    %c0_i32_0 = arith.constant 0 : i32
    %c0_i32_1 = arith.constant 0 : i32
    return %c0_i32, %c0_i32_0 : i32, i32
  }
  func.func @transform_9(%arg0: i32) -> (i32, i32) {
    %c0_i32 = arith.constant 0 : i32
    %c0_i32_0 = arith.constant 0 : i32
    return %arg0, %c0_i32 : i32, i32
  }
}

</mosaic_0001>

<bundles_post_ra>
// kernel: tpu_custom_call.1
= control target key start
LH: loop header
LB: loop body
LE: loop exit
PB: predicated region body
PF: predicated region fallthrough
CT: control target
= control target key end

     0   :  { %14 = vsyncpa [#allocation3], 0  ;;  %s1321_s0 = inlined_call_operand.vmem [shape: f32[8,32], index: 0, kind: input, shape index: {}]   ;;  %s1322_s1 = inlined_call_operand.vmem [shape: bf16[32,256], index: 1, kind: input, shape index: {}]   ;;  %s1323_s2 = inlined_call_operand.vmem [shape: f32[1,256], index: 2, kind: input, shape index: {}]   ;;  %s1324_s3 = inlined_call_operand.hbm [shape: bf16[256,256], index: 3, kind: input, shape index: {}]   ;;  %s1325_s4 = inlined_call_operand.vmem [shape: f32[1,256], index: 4, kind: input, shape index: {}]   ;;  %s1326_s5 = inlined_call_operand.hbm [shape: bf16[256,256], index: 5, kind: input, shape index: {}]   ;;  %s1327_s6 = inlined_call_operand.vmem [shape: f32[1,256], index: 6, kind: input, shape index: {}]   ;;  %s1328_s7 = inlined_call_operand.vmem [shape: bf16[256,10], index: 7, kind: input, shape index: {}]   ;;  %s1329_s8 = inlined_call_operand.vmem [shape: f32[1,10], index: 8, kind: input, shape index: {}]   ;;  %s1330_s9 = inlined_call_operand.hbm [shape: f32[8,10], index: 9, kind: output, shape index: {}]  }
   0x1   :  { %15 = vsyncpa [#allocation6], 0 }
   0x2   :  { %16 = vsyncpa [#allocation4], 0  ;;  %s1144_s30 = smov [#allocation2]   ;;  %s1072_s13 = scalar_lea.hbm %s1324_s3, 4096 }
   0x3   :  { %s28_s10 = sshll.u32 %s1144_s30, 4  ;;  %p1073_p0 = scmp.ne.s32.totalorder %s1324_s3, %s1072_s13  ;;  %s29_s10 = int_to_ptr.vmem [resolvable:$true] %s28_s10 }
   0x4   :  { %p1076_p1 = scmp.lt.u32.totalorder %s1072_s13, %s1324_s3 }
   0x6   :  { %p1078_p2 = pnand %p1076_p1, %p1073_p0 }
   0x8   :  { %1081 = shalt.err (!%p1078_p2)
}
   0x9   :  { %s1082_s18 = scalar_lea.vmem %s29_s10, 4096  ;;  %p1087_p4 = scmp.lt.s32.totalorder %s29_s10, %s29_s10 }
   0xa   :  { %p1083_p3 = scmp.ne.s32.totalorder %s29_s10, %s1082_s18  ;;  %p1088_p5 = scmp.lt.s32.totalorder %s1082_s18, %s1082_s18 }
   0xc   :  { %p1089_p6 = por %p1088_p5, %p1087_p4 }
   0xe   :  { %p1090_p7 = pnand %p1089_p6, %p1083_p3 }
  0x10   :  { %1093 = shalt.err (!%p1090_p7)
}
  0x11   :  { %s1145_s19 = smov 128   ;;  %s1146_s20 = smov 8  }
  0x12   :  { %34 = dma.hbm_to_vmem [thread:$0]  %s1324_s3, 4096, %s29_s10, [#allocation3], %s1145_s19, %s1145_s19, %s1146_s20  }
  0x13   :  { %s1147_s23 = smov [#allocation5]   ;;  %s1094_s27 = scalar_lea.hbm %s1326_s5, 4096 }
  0x14   :  { %s42_s24 = sshll.u32 %s1147_s23, 4  ;;  %p1095_p8 = scmp.ne.s32.totalorder %s1326_s5, %s1094_s27  ;;  %s43_s24 = int_to_ptr.vmem [resolvable:$true] %s42_s24 }
  0x15   :  { %p1098_p9 = scmp.lt.u32.totalorder %s1094_s27, %s1326_s5 }
  0x17   :  { %p1100_p10 = pnand %p1098_p9, %p1095_p8 }
  0x19   :  { %1103 = shalt.err (!%p1100_p10)
}
  0x1a   :  { %s1104_s12 = scalar_lea.vmem %s43_s24, 4096  ;;  %p1109_p12 = scmp.lt.s32.totalorder %s43_s24, %s43_s24 }
  0x1b   :  { %p1105_p11 = scmp.ne.s32.totalorder %s43_s24, %s1104_s12  ;;  %p1110_p13 = scmp.lt.s32.totalorder %s1104_s12, %s1104_s12 }
  0x1d   :  { %p1111_p0 = por %p1110_p13, %p1109_p12 }
  0x1f   :  { %p1112_p1 = pnand %p1111_p0, %p1105_p11 }
  0x21   :  { %1115 = shalt.err (!%p1112_p1)
}
  0x22   :  { %48 = dma.hbm_to_vmem [thread:$0]  %s1326_s5, 4096, %s43_s24, [#allocation6], %s1145_s19, %s1145_s19, %s1146_s20  }
  0x23   :  { %1138 = dma.done.wait [#allocation3], 4096  }
  0x24   :  { %1139 = vsyncadd [#allocation3], 4294963200 }
  0x25   :  { %1140 = dma.done.wait [#allocation6], 4096  }
  0x26   :  { %1141 = vsyncadd [#allocation6], 4294963200  ;;  %v1148_v0 = vmov 0   ;;  %v954_v1 = vld [vmem:[%s1322_s1 + $0x4] ss:$8 sps:$4 sm:$0xff]   ;;  %vm100_vm0 = vcmask 261120  }
  0x27   :  { %136 = vmatprep.mubr.bf16.mxu0 %v1148_v0  ;;  %v956_v2 = vld [vmem:[%s1322_s1] ss:$8 sps:$4 sm:$0xff]   ;;  %104 = vmatprep.subr.bf16.mxu0 %v954_v1  ;;  %v957_v3 = vld [vmem:[%s1322_s1 + $0x14] ss:$8 sps:$4 sm:$0xff]   ;;  %v959_v4 = vld [vmem:[%s1322_s1 + $0x10] ss:$8 sps:$4 sm:$0xff]  }
  0x28   :  { %v62_v5 = vld [vmem:[%s1321_s0] sm:$0xff]  ;;  %105 = vmatpush1.bf16.msra.mxu0 %v956_v2  ;;  %v963_v8 = vld [vmem:[#allocation2 + $0x14] ss:$8 sps:$4 sm:$0xff]   ;;  %v965_v10 = vld [vmem:[#allocation2 + $0x10] ss:$8 sps:$4 sm:$0xff]   ;;  %vm822_vm1 = vcmask 80896  }
  0x29   :  { %v960_v6 = vld [vmem:[#allocation2 + $0x4] ss:$8 sps:$4 sm:$0xff]   ;;  %106 = vmatprep.subr.bf16.mxu0 %v957_v3  ;;  %v962_v7 = vld [vmem:[#allocation2] ss:$8 sps:$4 sm:$0xff]   ;;  %v63_v9 = vpack.c.bf16 %v62_v5, %v62_v5  ;;  %v969_v13 = vld [vmem:[#allocation2 + $0x34] ss:$8 sps:$4 sm:$0xff]   ;;  %v70_v3 = vlaneseq }
  0x2a   :  { %353 = vmatprep.subr.bf16.mxu1 %v960_v6  ;;  %v966_v11 = vld [vmem:[#allocation2 + $0x24] ss:$8 sps:$4 sm:$0xff]   ;;  %v968_v12 = vld [vmem:[#allocation2 + $0x20] ss:$8 sps:$4 sm:$0xff]   ;;  %v971_v14 = vld [vmem:[#allocation2 + $0x30] ss:$8 sps:$4 sm:$0xff]  }
  0x2b   :  { %354 = vmatpush1.bf16.msra.mxu1 %v962_v7  ;;  %v972_v15 = vld [vmem:[#allocation2 + $0x44] ss:$8 sps:$4 sm:$0xff]   ;;  %v974_v16 = vld [vmem:[#allocation2 + $0x40] ss:$8 sps:$4 sm:$0xff]   ;;  %v975_v17 = vld [vmem:[#allocation2 + $0x54] ss:$8 sps:$4 sm:$0xff]  }
  0x2c   :  { %107 = vmatpush1.bf16.msra.mxu0 %v959_v4  ;;  %355 = vmatprep.subr.bf16.mxu1 %v963_v8  ;;  %v977_v18 = vld [vmem:[#allocation2 + $0x50] ss:$8 sps:$4 sm:$0xff]   ;;  %v978_v19 = vld [vmem:[#allocation2 + $0x64] ss:$8 sps:$4 sm:$0xff]   ;;  %v980_v20 = vld [vmem:[#allocation2 + $0x60] ss:$8 sps:$4 sm:$0xff]  }
  0x2d   :  { %v981_v21 = vld [vmem:[#allocation2 + $0x74] ss:$8 sps:$4 sm:$0xff]   ;;  %v983_v22 = vld [vmem:[#allocation2 + $0x70] ss:$8 sps:$4 sm:$0xff]   ;;  %v984_v23 = vld [vmem:[#allocation2 + $0x84] ss:$8 sps:$4 sm:$0xff]  }
  0x2e   :  { %v986_v24 = vld [vmem:[#allocation2 + $0x80] ss:$8 sps:$4 sm:$0xff]   ;;  %v987_v25 = vld [vmem:[#allocation2 + $0x94] ss:$8 sps:$4 sm:$0xff]   ;;  %v989_v26 = vld [vmem:[#allocation2 + $0x90] ss:$8 sps:$4 sm:$0xff]  }
  0x2f   :  { %844 = vmatmul.mubr.msk.bf16.vlgmr.msra.gmra.mrb[0].mxu0 %vm100_vm0, %v63_v9  ;;  %356 = vmatpush1.bf16.msra.mxu1 %v965_v10  ;;  %v990_v27 = vld [vmem:[#allocation2 + $0xa4] ss:$8 sps:$4 sm:$0xff]   ;;  %v992_v28 = vld [vmem:[#allocation2 + $0xa0] ss:$8 sps:$4 sm:$0xff]   ;;  %v993_v29 = vld [vmem:[#allocation2 + $0xb4] ss:$8 sps:$4 sm:$0xff]  }
  0x30   :  { %357 = vmatprep.subr.bf16.mxu1 %v966_v11  ;;  %v995_v30 = vld [vmem:[#allocation2 + $0xb0] ss:$8 sps:$4 sm:$0xff]   ;;  %v996_v31 = vld [vmem:[#allocation2 + $0xc4] ss:$8 sps:$4 sm:$0xff]   ;;  %v998_v32 = vld [vmem:[#allocation2 + $0xc0] ss:$8 sps:$4 sm:$0xff]  }
  0x31   :  { %v999_v33 = vld [vmem:[#allocation2 + $0xd4] ss:$8 sps:$4 sm:$0xff]   ;;  %v1001_v34 = vld [vmem:[#allocation2 + $0xd0] ss:$8 sps:$4 sm:$0xff]   ;;  %v1002_v35 = vld [vmem:[#allocation2 + $0xe4] ss:$8 sps:$4 sm:$0xff]  }
  0x32   :  { %v1004_v36 = vld [vmem:[#allocation2 + $0xe0] ss:$8 sps:$4 sm:$0xff]   ;;  %v1005_v37 = vld [vmem:[#allocation2 + $0xf4] ss:$8 sps:$4 sm:$0xff]   ;;  %v1007_v38 = vld [vmem:[#allocation2 + $0xf0] ss:$8 sps:$4 sm:$0xff]  }
  0x33   :  { %358 = vmatpush1.bf16.msra.mxu1 %v968_v12  ;;  %v1008_v39 = vld [vmem:[#allocation5] ss:$8 sps:$4 sm:$0xff]   ;;  %v1010_v40 = vld [vmem:[#allocation5 + $0x4] ss:$8 sps:$4 sm:$0xff]   ;;  %v1013_v41 = vld [vmem:[#allocation5 + $0x14] ss:$8 sps:$4 sm:$0xff]  }
  0x34   :  { %359 = vmatprep.subr.bf16.mxu1 %v969_v13  ;;  %602 = vmatprep.subr.bf16.mxu0 %v1010_v40  ;;  %v1011_v42 = vld [vmem:[#allocation5 + $0x10] ss:$8 sps:$4 sm:$0xff]   ;;  %v1016_v43 = vld [vmem:[#allocation5 + $0x24] ss:$8 sps:$4 sm:$0xff]   ;;  %v1014_v44 = vld [vmem:[#allocation5 + $0x20] ss:$8 sps:$4 sm:$0xff]  }
  0x35   :  { %603 = vmatpush1.bf16.msra.mxu0 %v1008_v39  ;;  %v1019_v45 = vld [vmem:[#allocation5 + $0x34] ss:$8 sps:$4 sm:$0xff]   ;;  %v1017_v46 = vld [vmem:[#allocation5 + $0x30] ss:$8 sps:$4 sm:$0xff]   ;;  %v1022_v47 = vld [vmem:[#allocation5 + $0x44] ss:$8 sps:$4 sm:$0xff]  }
  0x36   :  { %604 = vmatprep.subr.bf16.mxu0 %v1013_v41  ;;  %v1020_v48 = vld [vmem:[#allocation5 + $0x40] ss:$8 sps:$4 sm:$0xff]   ;;  %v1025_v49 = vld [vmem:[#allocation5 + $0x54] ss:$8 sps:$4 sm:$0xff]   ;;  %v1023_v50 = vld [vmem:[#allocation5 + $0x50] ss:$8 sps:$4 sm:$0xff]  }
  0x37   :  { %360 = vmatpush1.bf16.msra.mxu1 %v971_v14  ;;  %v1028_v51 = vld [vmem:[#allocation5 + $0x64] ss:$8 sps:$4 sm:$0xff]   ;;  %v1026_v52 = vld [vmem:[#allocation5 + $0x60] ss:$8 sps:$4 sm:$0xff]   ;;  %v1031_v53 = vld [vmem:[#allocation5 + $0x74] ss:$8 sps:$4 sm:$0xff]  }
  0x38   :  { %361 = vmatprep.subr.bf16.mxu1 %v972_v15  ;;  %v1029_v54 = vld [vmem:[#allocation5 + $0x70] ss:$8 sps:$4 sm:$0xff]   ;;  %v1034_v55 = vld [vmem:[#allocation5 + $0x84] ss:$8 sps:$4 sm:$0xff]   ;;  %v1032_v56 = vld [vmem:[#allocation5 + $0x80] ss:$8 sps:$4 sm:$0xff]  }
  0x39   :  { %605 = vmatpush1.bf16.msra.mxu0 %v1011_v42  ;;  %v1037_v57 = vld [vmem:[#allocation5 + $0x94] ss:$8 sps:$4 sm:$0xff]   ;;  %v1035_v58 = vld [vmem:[#allocation5 + $0x90] ss:$8 sps:$4 sm:$0xff]   ;;  %v1040_v59 = vld [vmem:[#allocation5 + $0xa4] ss:$8 sps:$4 sm:$0xff]  }
  0x3a   :  { %606 = vmatprep.subr.bf16.mxu0 %v1016_v43  ;;  %v1038_v60 = vld [vmem:[#allocation5 + $0xa0] ss:$8 sps:$4 sm:$0xff]   ;;  %v1043_v61 = vld [vmem:[#allocation5 + $0xb4] ss:$8 sps:$4 sm:$0xff]   ;;  %v1041_v62 = vld [vmem:[#allocation5 + $0xb0] ss:$8 sps:$4 sm:$0xff]  }
  0x3b   :  { %362 = vmatpush1.bf16.msra.mxu1 %v974_v16  ;;  %v1046_v63 = vld [vmem:[#allocation5 + $0xc4] ss:$8 sps:$4 sm:$0xff]   ;;  %v1044_v0 = vld [vmem:[#allocation5 + $0xc0] ss:$8 sps:$4 sm:$0xff]   ;;  %v1049_v1 = vld [vmem:[#allocation5 + $0xd4] ss:$8 sps:$4 sm:$0xff]  }
  0x3c   :  { %363 = vmatprep.subr.bf16.mxu1 %v975_v17  ;;  %v1047_v2 = vld [vmem:[#allocation5 + $0xd0] ss:$8 sps:$4 sm:$0xff]   ;;  %v71_v4 = vshrl.u32 %v70_v3, 7  ;;  %v68_v6 = vld [vmem:[%s1323_s2] sm:$0x3] }
  0x3d   :  { %607 = vmatpush1.bf16.msra.mxu0 %v1014_v44  ;;  %v909_v3 = vld [vmem:[%s1329_s8] ss:$0 sm:$0xff] }
  0x3e   :  { %608 = vmatprep.subr.bf16.mxu0 %v1019_v45  ;;  %v1239_v5 = vsub.s32 0, %v71_v4  ;;  %v1244_v7 = vsub.s32 1, %v71_v4 }
  0x3f   :  { %364 = vmatpush1.bf16.msra.mxu1 %v977_v18 }
  0x40   :  { %365 = vmatprep.subr.bf16.mxu1 %v978_v19  ;;  %v73_v8 = vrot.slane %v68_v6, %v1239_v5  ;;  %v77_v9 = vrot.slane %v68_v6, %v1244_v7 }
  0x41   :  { %609 = vmatpush1.bf16.msra.mxu0 %v1017_v46 }
  0x42   :  { %610 = vmatprep.subr.bf16.mxu0 %v1022_v47 }
  0x43   :  { %366 = vmatpush1.bf16.msra.mxu1 %v980_v20  ;;  %v1052_v20 = vld [vmem:[#allocation5 + $0xe4] ss:$8 sps:$4 sm:$0xff]  }
  0x44   :  { %367 = vmatprep.subr.bf16.mxu1 %v981_v21  ;;  %v1050_v21 = vld [vmem:[#allocation5 + $0xe0] ss:$8 sps:$4 sm:$0xff]  }
  0x45   :  { %611 = vmatpush1.bf16.msra.mxu0 %v1020_v48 }
  0x46   :  { %612 = vmatprep.subr.bf16.mxu0 %v1025_v49  ;;  %v1068_v49 = vld [vmem:[%s1328_s7 + $0x70] sm:$0xff]  }
  0x47   :  { %368 = vmatpush1.bf16.msra.mxu1 %v983_v22  ;;  %v1055_v22 = vld [vmem:[#allocation5 + $0xf4] ss:$8 sps:$4 sm:$0xff]  }
  0x48   :  { %369 = vmatprep.subr.bf16.mxu1 %v984_v23  ;;  %v1053_v23 = vld [vmem:[#allocation5 + $0xf0] ss:$8 sps:$4 sm:$0xff]  }
  0x49   :  { %613 = vmatpush1.bf16.msra.mxu0 %v1023_v50  ;;  %v1069_v50 = vld [vmem:[%s1328_s7 + $0x30] sm:$0xff]  }
  0x4a   :  { %614 = vmatprep.subr.bf16.mxu0 %v1028_v51  ;;  %v1070_v51 = vld [vmem:[%s1328_s7 + $0x78] sm:$0xff]  }
  0x4b   :  { %370 = vmatpush1.bf16.msra.mxu1 %v986_v24  ;;  %v1056_v24 = vld [vmem:[%s1328_s7 + $0x40] sm:$0xff]  }
  0x4c   :  { %371 = vmatprep.subr.bf16.mxu1 %v987_v25  ;;  %v1057_v25 = vld [vmem:[%s1328_s7] sm:$0xff]  }
  0x4d   :  { %615 = vmatpush1.bf16.msra.mxu0 %v1026_v52  ;;  %v1071_v52 = vld [vmem:[%s1328_s7 + $0x38] sm:$0xff]  }
  0x4e   :  { %616 = vmatprep.subr.bf16.mxu0 %v1031_v53  ;;  %v430_v53 = vld [vmem:[%s1327_s6] sm:$0x3]  ;;  %s1149_s6 = smov [#allocation7]  }
  0x4f   :  { %372 = vmatpush1.bf16.msra.mxu1 %v989_v26  ;;  %v1058_v26 = vld [vmem:[%s1328_s7 + $0x48] sm:$0xff]   ;;  %s830_s11 = sshll.u32 %s1149_s6, 4  ;;  %s831_s11 = int_to_ptr.vmem [resolvable:$true] %s830_s11 }
  0x50   :  { %373 = vmatprep.subr.bf16.mxu1 %v990_v27  ;;  %v1059_v27 = vld [vmem:[%s1328_s7 + $0x8] sm:$0xff]   ;;  %s1116_s12 = scalar_lea.vmem %s831_s11, 128  ;;  %p1121_p3 = scmp.lt.s32.totalorder %s831_s11, %s831_s11 }
  0x51   :  { %617 = vmatpush1.bf16.msra.mxu0 %v1029_v54  ;;  %v435_v54 = vrot.slane %v430_v53, %v1239_v5  ;;  %p1117_p2 = scmp.ne.s32.totalorder %s831_s11, %s1116_s12  ;;  %p1122_p4 = scmp.lt.s32.totalorder %s1116_s12, %s1116_s12 }
  0x52   :  { %618 = vmatprep.subr.bf16.mxu0 %v1034_v55  ;;  %v439_v55 = vrot.slane %v430_v53, %v1244_v7 }
  0x53   :  { %374 = vmatpush1.bf16.msra.mxu1 %v992_v28  ;;  %v1060_v28 = vld [vmem:[%s1328_s7 + $0x50] sm:$0xff]   ;;  %p1123_p5 = por %p1122_p4, %p1121_p3 }
  0x54   :  { %375 = vmatprep.subr.bf16.mxu1 %v993_v29  ;;  %v1061_v29 = vld [vmem:[%s1328_s7 + $0x10] sm:$0xff]  }
  0x55   :  { %619 = vmatpush1.bf16.msra.mxu0 %v1032_v56  ;;  %p1124_p6 = pnand %p1123_p5, %p1117_p2 }
  0x56   :  { %620 = vmatprep.subr.bf16.mxu0 %v1037_v57 }
  0x57   :  { %376 = vmatpush1.bf16.msra.mxu1 %v995_v30  ;;  %v1062_v30 = vld [vmem:[%s1328_s7 + $0x58] sm:$0xff]  }
  0x58   :  { %377 = vmatprep.subr.bf16.mxu1 %v996_v31  ;;  %v1063_v31 = vld [vmem:[%s1328_s7 + $0x18] sm:$0xff]  }
  0x59   :  { %621 = vmatpush1.bf16.msra.mxu0 %v1035_v58 }
  0x5a   :  { %622 = vmatprep.subr.bf16.mxu0 %v1040_v59 }
  0x5b   :  { %378 = vmatpush1.bf16.msra.mxu1 %v998_v32  ;;  %v1064_v32 = vld [vmem:[%s1328_s7 + $0x60] sm:$0xff]  }
  0x5c   :  { %379 = vmatprep.subr.bf16.mxu1 %v999_v33  ;;  %v1065_v33 = vld [vmem:[%s1328_s7 + $0x20] sm:$0xff]  }
  0x5d   :  { %623 = vmatpush1.bf16.msra.mxu0 %v1038_v60 }
  0x5e   :  { %624 = vmatprep.subr.bf16.mxu0 %v1043_v61 }
  0x5f   :  { %380 = vmatpush1.bf16.msra.mxu1 %v1001_v34  ;;  %v1066_v34 = vld [vmem:[%s1328_s7 + $0x68] sm:$0xff]  }
  0x60   :  { %381 = vmatprep.subr.bf16.mxu1 %v1002_v35  ;;  %v1067_v35 = vld [vmem:[%s1328_s7 + $0x28] sm:$0xff]  }
  0x61   :  { %625 = vmatpush1.bf16.msra.mxu0 %v1041_v62 }
  0x62   :  { %626 = vmatprep.subr.bf16.mxu0 %v1046_v63 }
  0x63   :  { %382 = vmatpush1.bf16.msra.mxu1 %v1004_v36  ;;  %v181_v36 = vld [vmem:[%s1325_s4] sm:$0x3] }
  0x64   :  { %383 = vmatprep.subr.bf16.mxu1 %v1005_v37  ;;  %v186_v37 = vrot.slane %v181_v36, %v1239_v5 }
  0x65   :  { %627 = vmatpush1.bf16.msra.mxu0 %v1044_v0 }
  0x66   :  { %628 = vmatprep.subr.bf16.mxu0 %v1049_v1 }
  0x67   :  { %384 = vmatpush1.bf16.msra.mxu1 %v1007_v38  ;;  %v190_v38 = vrot.slane %v181_v36, %v1244_v7 }
  0x68   :  { %926 = vmatprep.subr.bf16.mxu1 %v1056_v24 }
  0x69   :  { %629 = vmatpush1.bf16.msra.mxu0 %v1047_v2 }
  0x6a   :  { %630 = vmatprep.subr.bf16.mxu0 %v1052_v20 }
  0x6d   :  { %631 = vmatpush1.bf16.msra.mxu0 %v1050_v21 }
  0x6e   :  { %632 = vmatprep.subr.bf16.mxu0 %v1055_v22 }
  0x71   :  { %633 = vmatpush1.bf16.msra.mxu0 %v1053_v23 }
 0x102   :  { %v138_v10 = vpop.f32.mrb[0].mxu0 }
 0x103   :  { %v139_v11 = vadd.f32 %v138_v10, %v73_v8  ;;  %v140_v12 = vpop.f32.mrb[1].mxu0 }
 0x104   :  { %v141_v13 = vadd.f32 %v140_v12, %v77_v9  ;;  %v142_v14 = vpop.f32.mrb[2].mxu0 }
 0x105   :  { %v145_v15 = vmax.f32 %v139_v11, 0.0  ;;  %v143_v16 = vpop.f32.mrb[3].mxu0 }
 0x106   :  { %v146_v17 = vmax.f32 %v141_v13, 0.0 }
 0x107   :  { %v147_v19 = vpack.c.bf16 %v145_v15, %v145_v15 }
 0x108   :  { %v148_v18 = vpack.c.bf16 %v146_v17, %v146_v17 }
 0x10a   :  { %385 = vmatprep.mubr.bf16.mxu1 %v148_v18 }
 0x10b   :  { %386 = vmatmul.mubr.bf16.vlgmr.msra.gmra.mrb[0].mxu1 %v147_v19 }
 0x10c   :  { %927 = vmatpush3.bf16.msra.mxu1 %v1057_v25 }
 0x10d   :  { %928 = vmatprep.subr.bf16.mxu1 %v1058_v26 }
 0x110   :  { %929 = vmatpush3.bf16.msra.mxu1 %v1059_v27 }
 0x111   :  { %930 = vmatprep.subr.bf16.mxu1 %v1060_v28 }
 0x114   :  { %931 = vmatpush3.bf16.msra.mxu1 %v1061_v29 }
 0x115   :  { %932 = vmatprep.subr.bf16.mxu1 %v1062_v30 }
 0x118   :  { %933 = vmatpush3.bf16.msra.mxu1 %v1063_v31 }
 0x119   :  { %934 = vmatprep.subr.bf16.mxu1 %v1064_v32 }
 0x11c   :  { %935 = vmatpush3.bf16.msra.mxu1 %v1065_v33 }
 0x11d   :  { %936 = vmatprep.subr.bf16.mxu1 %v1066_v34 }
 0x120   :  { %937 = vmatpush3.bf16.msra.mxu1 %v1067_v35 }
 0x121   :  { %938 = vmatprep.subr.bf16.mxu1 %v1068_v49 }
 0x124   :  { %939 = vmatpush3.bf16.msra.mxu1 %v1069_v50 }
 0x125   :  { %940 = vmatprep.subr.bf16.mxu1 %v1070_v51 }
 0x128   :  { %941 = vmatpush3.bf16.msra.mxu1 %v1071_v52 }
 0x1de   :  { %v387_v39 = vpop.f32.mrb[0].mxu1 }
 0x1df   :  { %v388_v40 = vadd.f32 %v387_v39, %v186_v37  ;;  %v389_v41 = vpop.f32.mrb[1].mxu1 }
 0x1e0   :  { %v390_v42 = vadd.f32 %v389_v41, %v190_v38  ;;  %v391_v43 = vpop.f32.mrb[2].mxu1 }
 0x1e1   :  { %v394_v44 = vmax.f32 %v388_v40, 0.0  ;;  %v392_v45 = vpop.f32.mrb[3].mxu1 }
 0x1e2   :  { %v395_v46 = vmax.f32 %v390_v42, 0.0 }
 0x1e3   :  { %v396_v48 = vpack.c.bf16 %v394_v44, %v394_v44 }
 0x1e4   :  { %v397_v47 = vpack.c.bf16 %v395_v46, %v395_v46 }
 0x1e6   :  { %634 = vmatprep.mubr.bf16.mxu0 %v397_v47 }
 0x1e7   :  { %635 = vmatmul.mubr.bf16.vlgmr.msra.gmra.mrb[4].mxu0 %v396_v48 }
 0x2ba   :  { %v636_v56 = vpop.f32.mrb[4].mxu0 }
 0x2bb   :  { %v637_v57 = vadd.f32 %v636_v56, %v435_v54  ;;  %v638_v58 = vpop.f32.mrb[5].mxu0 }
 0x2bc   :  { %v639_v59 = vadd.f32 %v638_v58, %v439_v55  ;;  %v640_v60 = vpop.f32.mrb[6].mxu0 }
 0x2bd   :  { %v643_v61 = vmax.f32 %v637_v57, 0.0  ;;  %v641_v62 = vpop.f32.mrb[7].mxu0 }
 0x2be   :  { %v644_v63 = vmax.f32 %v639_v59, 0.0 }
 0x2bf   :  { %v645_v1 = vpack.c.bf16 %v643_v61, %v643_v61 }
 0x2c0   :  { %v646_v0 = vpack.c.bf16 %v644_v63, %v644_v63 }
 0x2c2   :  { %814 = vmatprep.mubr.bf16.mxu1 %v646_v0 }
 0x2c3   :  { %815 = vmatmul.mubr.bf16.vlgmr.msra.gmra.mrb[4].mxu1 %v645_v1 }
 0x396   :  { %v942_v2 = vpop.f32.mrb[4].mxu1 }
 0x397   :  { %v943_v4 = vpop.f32.mrb[5].mxu1 }
 0x398   :  { %v944_v5 = vadd.f32 %v943_v4, %v942_v2  ;;  %v945_v6 = vpop.f32.mrb[6].mxu1 }
 0x399   :  { %v946_v7 = vpop.f32.mrb[7].mxu1 }
 0x39a   :  { %v817_v8 = vadd.f32 %v944_v5, %v909_v3 }
 0x39c   :  { %823 = vst.msk [vmem:[#allocation7] sm:$0xff] %vm822_vm1, %v817_v8 }
 0x39d   :  { %1127 = shalt.err (!%p1124_p6)
}
 0x39e   :  { %s1128_s8 = scalar_lea.hbm %s1330_s9, 128 }
 0x39f   :  { %p1129_p7 = scmp.ne.s32.totalorder %s1330_s9, %s1128_s8  ;;  %p1132_p8 = scmp.lt.u32.totalorder %s1128_s8, %s1330_s9 }
 0x3a1   :  { %p1134_p9 = pnand %p1132_p8, %p1129_p7 }
 0x3a3   :  { %1137 = shalt.err (!%p1134_p9)
}
 0x3a4   :  { %833 = dma.vmem_to_hbm [thread:$0]  %s831_s11, 128, %s1330_s9, [#allocation4]  }
 0x3a5   :  { %1142 = dma.done.wait [#allocation4], 128  }
 0x3a6   :  { %1143 = vsyncadd [#allocation4], 4294967168 }
 0x3a7   :  { %837 = vsyncpa [#allocation3], 1 }
 0x3a8   :  { %838 = vsyncpa [#allocation6], 1 }
 0x3a9   :  { %839 = vsyncpa [#allocation4], 1 }

</bundles_post_ra>
